<compile_context>
chip_gen: v7x
topology: tpu7x:2x2x1
jax: 0.10.0
libtpu: 0.0.40
codegen_flags: <defaults>
</compile_context>

<pallas_src>
import jax
import jax.numpy as jnp
import numpy as np
from jax.experimental import pallas as pl
from jax.experimental.pallas import tpu as pltpu


def _gcn_kernel(src_ref, dst_ref, adj_ref, params_ref, out_ref):
    # src_ref:    (Ct, num_src, 1)
    # dst_ref:    (Ct, 1, num_dst)
    # adj_ref:    (Ct, num_src, num_dst)
    # params_ref: (Ct, 1, 4) = [w_self_dst, b_self_dst, w_conv_dst, b_conv_dst]
    # out_ref:    (Ct, 1, num_dst)
    adj = adj_ref[...]
    src = src_ref[...]
    dst = dst_ref[...]
    p = params_ref[...]

    # col_sum and msg share the same adj read; sublane (XLU) reduce over num_src,
    # lane-broadcast multiply on the VPU.  No MXU involvement.
    col_sum = jnp.sum(adj, axis=1, keepdims=True)            # (Ct, 1, num_dst)
    msg = jnp.sum(src * adj, axis=1, keepdims=True)          # (Ct, 1, num_dst)
    # Exact reciprocal to stay within the 1e-5 test tolerance; approx=True moves
    # it to the EUP slot if looser precision is acceptable.
    # (No zero-guard: the PyTorch module divides unguarded as well.)
    msg = msg * pl.reciprocal(col_sum)

    w_self = p[:, :, 0:1]
    b_self = p[:, :, 1:2]
    w_msg = p[:, :, 2:3]
    b_msg = p[:, :, 3:4]
    out_ref[...] = (w_self * dst + b_self + w_msg * msg + b_msg).astype(out_ref.dtype)


def _choose_channel_tile(C, num_src, num_dst, itemsize, vmem_budget_bytes):
    """Largest divisor of C whose double-buffered blocks fit the VMEM budget."""
    per_ch = (num_src * num_dst      # adj
              + num_src              # src
              + 2 * num_dst          # dst + out
              + 4) * itemsize        # params
    divisors = [d for d in range(1, C + 1) if C % d == 0]
    fitting = [d for d in divisors if 2 * d * per_ch <= vmem_budget_bytes]
    return max(fitting) if fitting else 1


def gcn_block(emb_src, emb_dst, adj_mat, params, *, vmem_budget_bytes=8 << 20):
    """params: (C, 4) float32 = [w_self_dst, b_self_dst, w_conv_dst, b_conv_dst]."""
    bs, C, one, num_src = emb_src.shape
    num_dst = emb_dst.shape[-1]
    assert one == 1
    assert emb_dst.shape == (bs, C, 1, num_dst)
    assert adj_mat.shape == (bs, C, num_src, num_dst)
    assert params.shape == (C, 4)

    itemsize = jnp.dtype(adj_mat.dtype).itemsize
    Ct = _choose_channel_tile(C, num_src, num_dst, itemsize, vmem_budget_bytes)

    # Metadata-only reshapes (size-1 axes move, data untouched):
    #   src -> (bs, C, num_src, 1)   (== transpose(2,3) of the original layout)
    #   params -> (C, 1, 4)
    src_r = emb_src.reshape(bs, C, num_src, 1)
    params_r = params.reshape(C, 1, 4)

    grid = (bs, C // Ct)
    return pl.pallas_call(
        _gcn_kernel,
        out_shape=jax.ShapeDtypeStruct((bs, C, 1, num_dst), emb_dst.dtype),
        grid=grid,
        in_specs=[
            pl.BlockSpec((None, Ct, num_src, 1), lambda b, c: (b, c, 0, 0)),        # src
            pl.BlockSpec((None, Ct, 1, num_dst), lambda b, c: (b, c, 0, 0)),        # dst
            pl.BlockSpec((None, Ct, num_src, num_dst), lambda b, c: (b, c, 0, 0)),  # adj
            pl.BlockSpec((Ct, 1, 4), lambda b, c: (c, 0, 0)),                       # params
        ],
        out_specs=pl.BlockSpec((None, Ct, 1, num_dst), lambda b, c: (b, c, 0, 0)),
        compiler_params=pltpu.CompilerParams(
            dimension_semantics=("parallel", "parallel")),
    )(src_r, emb_dst, adj_mat, params_r)


def gcn_ref(emb_src, emb_dst, adj_mat, params):
    # pure-JAX reference mirroring the PyTorch forward
    w_self = params[:, 0].reshape(1, -1, 1, 1)
    b_self = params[:, 1].reshape(1, -1, 1, 1)
    w_msg = params[:, 2].reshape(1, -1, 1, 1)
    b_msg = params[:, 3].reshape(1, -1, 1, 1)
    emb_src_t = jnp.swapaxes(emb_src, 2, 3)
    emb_dst_t = jnp.swapaxes(emb_dst, 2, 3)
    adj_t = jnp.swapaxes(adj_mat, 2, 3)
    adj_t = adj_t / jnp.sum(adj_t, axis=-1, keepdims=True)
    msg = adj_t @ emb_src_t                                   # (bs, C, num_dst, 1)
    out_t = w_self * emb_dst_t + b_self + w_msg * msg + b_msg
    return jnp.swapaxes(out_t, 2, 3)


if __name__ == "__main__":
    bs, C, num_src, num_dst = 2, 4, 16, 16
    key = jax.random.PRNGKey(0)
    k = jax.random.split(key, 11)

    emb_src = jax.random.normal(k[0], (bs, C, 1, num_src), jnp.float32)
    emb_dst = jax.random.normal(k[1], (bs, C, 1, num_dst), jnp.float32)
    # strictly positive adjacency so the row-normalization is well defined
    adj_mat = jax.random.uniform(k[2], (bs, C, num_src, num_dst), jnp.float32) + 0.1

    # Per-channel scalar weight + bias for each grouped 1x1 conv.
    # conv2d_src / self_conv2d_src are initialized but unused in forward
    # (matching the PyTorch module).
    w_conv_src = jax.random.uniform(k[3], (C,), jnp.float32, -1.0, 1.0)
    b_conv_src = jax.random.uniform(k[4], (C,), jnp.float32, -1.0, 1.0)
    w_conv_dst = jax.random.uniform(k[5], (C,), jnp.float32, -1.0, 1.0)
    b_conv_dst = jax.random.uniform(k[6], (C,), jnp.float32, -1.0, 1.0)
    w_self_src = jax.random.uniform(k[7], (C,), jnp.float32, -1.0, 1.0)
    b_self_src = jax.random.uniform(k[8], (C,), jnp.float32, -1.0, 1.0)
    w_self_dst = jax.random.uniform(k[9], (C,), jnp.float32, -1.0, 1.0)
    b_self_dst = jax.random.uniform(k[10], (C,), jnp.float32, -1.0, 1.0)

    # only self_conv2d_dst and conv2d_dst participate in the forward pass
    params = jnp.stack([w_self_dst, b_self_dst, w_conv_dst, b_conv_dst], axis=1)  # (C, 4)

    out = gcn_block(emb_src, emb_dst, adj_mat, params)
    jax.block_until_ready(out)

    ref = gcn_ref(emb_src, emb_dst, adj_mat, params)
    np.testing.assert_allclose(np.asarray(out), np.asarray(ref), rtol=1e-5, atol=1e-5)

    print("KERNEL_OK")
</pallas_src>

<mosaic_0001>
module attributes {stable_mosaic.version = 11 : i64} {
  func.func @_gcn_kernel(%arg0: i32, %arg1: i32, %arg2: memref<1x4x16x1xf32, #tpu.memory_space<vmem>>, %arg3: memref<1x4x1x16xf32, #tpu.memory_space<vmem>>, %arg4: memref<1x4x16x16xf32, #tpu.memory_space<vmem>>, %arg5: memref<4x1x4xf32, #tpu.memory_space<vmem>>, %arg6: memref<1x4x1x16xf32, #tpu.memory_space<vmem>>) attributes {dimension_semantics = [#tpu.dimension_semantics<parallel>, #tpu.dimension_semantics<parallel>], iteration_bounds = array<i64: 2, 1>, scalar_prefetch = 0 : i64, scratch_operands = 0 : i64, tpu.core_type = #tpu.core_type<tc>, window_params = [{transform_indices = @transform_0, window_bounds = array<i64: 1, 4, 16, 1>}, {transform_indices = @transform_1, window_bounds = array<i64: 1, 4, 1, 16>}, {transform_indices = @transform_2, window_bounds = array<i64: 1, 4, 16, 16>}, {transform_indices = @transform_3, window_bounds = array<i64: 4, 1, 4>}, {transform_indices = @transform_4, window_bounds = array<i64: 1, 4, 1, 16>}]} {
    %c0 = arith.constant 0 : index
    %c0_0 = arith.constant 0 : index
    %c0_1 = arith.constant 0 : index
    %c0_2 = arith.constant 0 : index
    %0 = vector.load %arg4[%c0, %c0_0, %c0_1, %c0_2] : memref<1x4x16x16xf32, #tpu.memory_space<vmem>>, vector<1x4x16x16xf32>
    %1 = vector.shape_cast %0 : vector<1x4x16x16xf32> to vector<4x16x16xf32>
    %c0_3 = arith.constant 0 : index
    %c0_4 = arith.constant 0 : index
    %c0_5 = arith.constant 0 : index
    %c0_6 = arith.constant 0 : index
    %2 = vector.load %arg2[%c0_3, %c0_4, %c0_5, %c0_6] : memref<1x4x16x1xf32, #tpu.memory_space<vmem>>, vector<1x4x16x1xf32>
    %3 = vector.shape_cast %2 : vector<1x4x16x1xf32> to vector<4x16x1xf32>
    %c0_7 = arith.constant 0 : index
    %c0_8 = arith.constant 0 : index
    %c0_9 = arith.constant 0 : index
    %c0_10 = arith.constant 0 : index
    %4 = vector.load %arg3[%c0_7, %c0_8, %c0_9, %c0_10] : memref<1x4x1x16xf32, #tpu.memory_space<vmem>>, vector<1x4x1x16xf32>
    %5 = vector.shape_cast %4 : vector<1x4x1x16xf32> to vector<4x1x16xf32>
    %c0_11 = arith.constant 0 : index
    %c0_12 = arith.constant 0 : index
    %c0_13 = arith.constant 0 : index
    %6 = vector.load %arg5[%c0_11, %c0_12, %c0_13] : memref<4x1x4xf32, #tpu.memory_space<vmem>>, vector<4x1x4xf32>
    %cst = arith.constant dense<0.000000e+00> : vector<4x16xf32>
    %7 = vector.multi_reduction <add>, %1, %cst [1] : vector<4x16x16xf32> to vector<4x16xf32>
    %8 = vector.shape_cast %7 : vector<4x16xf32> to vector<4x1x16xf32>
    %9 = vector.broadcast %3 : vector<4x16x1xf32> to vector<4x16x16xf32>
    %10 = arith.mulf %9, %1 : vector<4x16x16xf32>
    %cst_14 = arith.constant dense<0.000000e+00> : vector<4x16xf32>
    %11 = vector.multi_reduction <add>, %10, %cst_14 [1] : vector<4x16x16xf32> to vector<4x16xf32>
    %12 = vector.shape_cast %11 : vector<4x16xf32> to vector<4x1x16xf32>
    %13 = tpu.reciprocal %8 : vector<4x1x16xf32> -> vector<4x1x16xf32>
    %14 = arith.mulf %12, %13 : vector<4x1x16xf32>
    %15 = vector.extract_strided_slice %6 {offsets = [0, 0, 0], sizes = [4, 1, 1], strides = [1, 1, 1]} : vector<4x1x4xf32> to vector<4x1x1xf32>
    %16 = vector.extract_strided_slice %6 {offsets = [0, 0, 1], sizes = [4, 1, 1], strides = [1, 1, 1]} : vector<4x1x4xf32> to vector<4x1x1xf32>
    %17 = vector.extract_strided_slice %6 {offsets = [0, 0, 2], sizes = [4, 1, 1], strides = [1, 1, 1]} : vector<4x1x4xf32> to vector<4x1x1xf32>
    %18 = vector.extract_strided_slice %6 {offsets = [0, 0, 3], sizes = [4, 1, 1], strides = [1, 1, 1]} : vector<4x1x4xf32> to vector<4x1x1xf32>
    %19 = vector.broadcast %15 : vector<4x1x1xf32> to vector<4x1x16xf32>
    %20 = arith.mulf %19, %5 : vector<4x1x16xf32>
    %21 = vector.broadcast %16 : vector<4x1x1xf32> to vector<4x1x16xf32>
    %22 = arith.addf %20, %21 : vector<4x1x16xf32>
    %23 = vector.broadcast %17 : vector<4x1x1xf32> to vector<4x1x16xf32>
    %24 = arith.mulf %23, %14 : vector<4x1x16xf32>
    %25 = arith.addf %22, %24 : vector<4x1x16xf32>
    %26 = vector.broadcast %18 : vector<4x1x1xf32> to vector<4x1x16xf32>
    %27 = arith.addf %25, %26 : vector<4x1x16xf32>
    %c0_15 = arith.constant 0 : index
    %c0_16 = arith.constant 0 : index
    %c0_17 = arith.constant 0 : index
    %c0_18 = arith.constant 0 : index
    %28 = vector.load %arg6[%c0_15, %c0_16, %c0_17, %c0_18] : memref<1x4x1x16xf32, #tpu.memory_space<vmem>>, vector<1x4x1x16xf32>
    %29 = vector.shape_cast %28 : vector<1x4x1x16xf32> to vector<4x1x16xf32>
    %30 = vector.shape_cast %27 : vector<4x1x16xf32> to vector<1x4x1x16xf32>
    tpu.vector_store %arg6[%c0_15, %c0_16, %c0_17, %c0_18], %30 {strides = array<i32>} : memref<1x4x1x16xf32, #tpu.memory_space<vmem>>, vector<1x4x1x16xf32>,
    return
  }
  func.func @transform_0(%arg0: i32, %arg1: i32) -> (i32, i32, i32, i32) {
    %c0_i32 = arith.constant 0 : i32
    %c0_i32_0 = arith.constant 0 : i32
    %c0_i32_1 = arith.constant 0 : i32
    return %arg0, %arg1, %c0_i32, %c0_i32_0 : i32, i32, i32, i32
  }
  func.func @transform_1(%arg0: i32, %arg1: i32) -> (i32, i32, i32, i32) {
    %c0_i32 = arith.constant 0 : i32
    %c0_i32_0 = arith.constant 0 : i32
    %c0_i32_1 = arith.constant 0 : i32
    return %arg0, %arg1, %c0_i32, %c0_i32_0 : i32, i32, i32, i32
  }
  func.func @transform_2(%arg0: i32, %arg1: i32) -> (i32, i32, i32, i32) {
    %c0_i32 = arith.constant 0 : i32
    %c0_i32_0 = arith.constant 0 : i32
    %c0_i32_1 = arith.constant 0 : i32
    return %arg0, %arg1, %c0_i32, %c0_i32_0 : i32, i32, i32, i32
  }
  func.func @transform_3(%arg0: i32, %arg1: i32) -> (i32, i32, i32) {
    %c0_i32 = arith.constant 0 : i32
    %c0_i32_0 = arith.constant 0 : i32
    %c0_i32_1 = arith.constant 0 : i32
    return %arg1, %c0_i32, %c0_i32_0 : i32, i32, i32
  }
  func.func @transform_4(%arg0: i32, %arg1: i32) -> (i32, i32, i32, i32) {
    %c0_i32 = arith.constant 0 : i32
    %c0_i32_0 = arith.constant 0 : i32
    %c0_i32_1 = arith.constant 0 : i32
    return %arg0, %arg1, %c0_i32, %c0_i32_0 : i32, i32, i32, i32
  }
}

</mosaic_0001>

<bundles_post_ra>
// kernel: tpu_custom_call.1
= control target key start
LH: loop header
LB: loop body
LE: loop exit
PB: predicated region body
PF: predicated region fallthrough
CT: control target
= control target key end

     0   :  { %9 = vsyncpa [#allocation3], 0  ;;  %s1178_s0 = inlined_call_operand.vmem [shape: f32[2,4,16,1], index: 0, kind: input, shape index: {}]   ;;  %s1179_s1 = inlined_call_operand.vmem [shape: f32[2,4,1,16], index: 1, kind: input, shape index: {}]   ;;  %s1180_s2 = inlined_call_operand.vmem [shape: f32[2,4,16,16], index: 2, kind: input, shape index: {}]   ;;  %s1181_s3 = inlined_call_operand.vmem [shape: f32[4,1,4], index: 3, kind: input, shape index: {}]   ;;  %s1182_s4 = inlined_call_operand.hbm [shape: f32[2,4,1,16], index: 4, kind: output, shape index: {}]  }
   0x1   :  { %11 = vsyncpa [#allocation3 + $0x1], 0  ;;  %s986_s15 = smov 0   ;;  %s988_s16 = smov 0  }
   0x2   :  { %s990_s17 = smov 0   ;;  %s992_s18 = smov 0  }
   0x3   :  { %s994_s19 = smov 0   ;;  %s996_s20 = smov 0  }
   0x4 LB: > { %s777_s21 = sadd.s32 4294967295, %s952_s20   ;;  %s778_s22 = sadd.s32 4294967294, %s952_s20   ;;  %s952_s20 = sphi %s996_s20, %s17_s20   ;;  %s948_s19 = sphi %s994_s19, %s1189_s19   ;;  %s944_s18 = sphi %s992_s18, %s1188_s18   ;;  %s940_s17 = sphi %s990_s17, %s1187_s17   ;;  %s936_s16 = sphi %s988_s16, %s1186_s16   ;;  %s932_s15 = sphi %s986_s15, %s1185_s15  }
   0x5   : > { %s29_s23 = sadd.s32 1, %s948_s19  ;;  %s148_s24 = sadd.s32 1, %s940_s17 }
   0x6   : > { %p31_p0 = scmp.ge.s32.totalorder %s29_s23, 2  ;;  %p158_p1 = scmp.ne.s32.totalorder %s940_s17, %s936_s16 }
   0x7   : > { %p159_p2 = scmp.eq.s32.totalorder %s777_s21, 1  ;;  %p164_p3 = scmp.ne.s32.totalorder %s936_s16, %s932_s15 }
   0x8   : > { %s1191_s23 = smov (%p31_p0, %s29_s23), 0  ;;  %p165_p5 = scmp.eq.s32.totalorder %s778_s22, 1 }
   0x9   : > { %p1026_p4 = por %p159_p2, %p158_p1  ;;  %s143_s26 = ssub.s32 %s948_s19, %s1191_s23 }
   0xa   : > { %p782_p6 = scmp.ge.s32.totalorder %s952_s20, 1  ;;  %p146_p7 = scmp.eq.s32.totalorder %s143_s26, 0 }
   0xb   : > { %p1033_p8 = por %p165_p5, %p164_p3  ;;  %p231_p9 = scmp.lt.s32.totalorder %s952_s20, 3 }
   0xc   : > { %s1039_s28 = scalar_select %p146_p7, %s940_s17, %s148_s24  }
   0xd   : > { %p232_p10 = pnand %p782_p6, %p231_p9 }
   0xe   : > { %p285_p11 = scmp.lt.s32.totalorder (!%p232_p10), %s944_s18, 1  ;;  %v954_v0 = vmov (!%p232_p10), 0   ;;  %v342_v9 = vld [vmem:[%s1181_s3 + $0x1] sm:$0x1] (!%p232_p10)  ;;  %v341_v10 = vld [vmem:[%s1181_s3] sm:$0x1] (!%p232_p10) }
   0xf   : > { %235 = sbr.rel (%p232_p10) target bundleno = 225 (0xe1), region = 36  ;;  %859 = vset.pattern.permute.xlu1 (!%p232_p10), %v954_v0  ;;  %858 = vset.pattern.permute.xlu0 (!%p232_p10), %v954_v0  ;;  %v344_v11 = vld [vmem:[%s1181_s3 + $0x3] sm:$0x1] (!%p232_p10)  ;;  %v343_v12 = vld [vmem:[%s1181_s3 + $0x2] sm:$0x1] (!%p232_p10)  ;;  %v955_v13 = vmov (!%p232_p10), 1  }
  0x10   : > { %v956_v14 = vmov (!%p232_p10), 2   ;;  %v957_v15 = vmov (!%p232_p10), 3   ;;  %vm345_vm0 = vcmask (!%p232_p10), 130048   ;;  %vm626_vm1 = vcmask (!%p232_p10), 122880   ;;  %s796_s11 = sshll.u32 (!%p232_p10), %s944_s18, 6  ;;  %s958_s22 = smov (!%p232_p10), [#allocation2]  }
  0x11   : > { %s1125_s14 = scalar_lea.hbm (!%p232_p10), %s1182_s4, %s796_s11  ;;  %s878_s24 = sshll.u32 (!%p232_p10), %s958_s22, 4  ;;  %s879_s24 = int_to_ptr.vmem [resolvable:$false] %s878_s24 }
  0x16   : > { %s1043_s29 = scalar_select %p285_p11, %s944_s18, 1 }
  0x18   : > { %s794_s30 = sshll.u32 %s1043_s29, 6 }
  0x19   : > { %s293_s7 = scalar_lea.vmem %s1178_s0, %s794_s30  ;;  %s313_s26 = scalar_lea.vmem %s1180_s2, %s794_s30 }
  0x1a   : > { %v331_v1 = vld [vmem:[%s293_s7 + $0x10] sm:$0xff]  ;;  %v329_v2 = vld [vmem:[%s293_s7] sm:$0xff]  ;;  %v332_v3 = vld [vmem:[%s293_s7 + $0x18] sm:$0xff]  ;;  %s786_s30 = sshll.u32 %s1043_s29, 2  ;;  %s281_s29 = sand.u32 1, %s936_s16  }
  0x1b   : > { %394 = vperm.xlu1 %859, %v331_v1   ;;  %384 = vperm.xlu0 %858, %v329_v2   ;;  %v330_v4 = vld [vmem:[%s293_s7 + $0x8] sm:$0xff]  ;;  %v333_v6 = vld [vmem:[%s293_s7 + $0x20] sm:$0xff]  ;;  %v336_v7 = vld [vmem:[%s293_s7 + $0x38] sm:$0xff]  ;;  %s783_s8 = sshll.u32 %s281_s29, 2  ;;  %s1132_s18 = scalar_lea.sflag [#allocation3], %s281_s29 }
  0x1c   : > { %v334_v5 = vld [vmem:[%s293_s7 + $0x28] sm:$0xff]  ;;  %v335_v8 = vld [vmem:[%s293_s7 + $0x30] sm:$0xff]  ;;  %v321_v16 = vld [vmem:[%s313_s26] sm:$0xff]  ;;  %s1092_s7 = scalar_lea.vmem %s1179_s1, %s786_s30  ;;  %s283_s9 = scalar_lea.vmem [#allocation2], %s783_s8 }
  0x1d   : > { %v322_v17 = vld [vmem:[%s313_s26 + $0x8] sm:$0xff]  ;;  %v323_v18 = vld [vmem:[%s313_s26 + $0x10] sm:$0xff]  ;;  %v324_v19 = vld [vmem:[%s313_s26 + $0x18] sm:$0xff]  ;;  %v346_v20 = vsel %vm345_vm0, %v321_v16, 0.0  ;;  %s647_s10 = sshll.u32 %s283_s9, 4  ;;  %s1127_s10 = int_to_ptr.vmem [resolvable:$true] %s647_s10 }
  0x1e   : > { %v347_v21 = vsel %vm345_vm0, %v322_v17, 0.0  ;;  %v326_v22 = vld [vmem:[%s313_s26 + $0x28] sm:$0xff]  ;;  %v325_v23 = vld [vmem:[%s313_s26 + $0x20] sm:$0xff]  ;;  %v355_v24 = vsel %vm345_vm0, %v323_v18, 0.0  ;;  %v356_v25 = vsel %vm345_vm0, %v324_v19, 0.0  ;;  %v328_v31 = vld [vmem:[%s313_s26 + $0x38] sm:$0xff]  ;;  %p881_p1 = scmp.lt.s32.totalorder %s1127_s10, %s879_s24 }
  0x1f   : > { %399 = vperm.xlu1 %859, %v332_v3   ;;  %389 = vperm.xlu0 %858, %v330_v4   ;;  %v348_v26 = vadd.f32 %v347_v21, %v346_v20  ;;  %v365_v27 = vsel %vm345_vm0, %v326_v22, 0.0  ;;  %v364_v28 = vsel %vm345_vm0, %v325_v23, 0.0  ;;  %v357_v29 = vadd.f32 %v356_v25, %v355_v24  ;;  %v327_v32 = vld [vmem:[%s313_s26 + $0x30] sm:$0xff]  ;;  %s874_s21 = scalar_lea.vmem %s1127_s10, 64  ;;  %s880_s26 = scalar_lea.vmem %s879_s24, 128 }
  0x20   : > { %v366_v30 = vadd.f32 %v365_v27, %v364_v28  ;;  %v374_v35 = vsel %vm345_vm0, %v328_v31, 0.0  ;;  %v373_v36 = vsel %vm345_vm0, %v327_v32, 0.0  ;;  %p875_p12 = scmp.ne.s32.totalorder %s1127_s10, %s874_s21  ;;  %p882_p2 = scmp.lt.s32.totalorder %s880_s26, %s874_s21 }
  0x21   : > { %v349_v33 = vrot.slane %v348_v26, 4  ;;  %v358_v34 = vrot.slane %v357_v29, 4  ;;  %v375_v43 = vadd.f32 %v374_v35, %v373_v36 }
  0x22   : > { %v367_v39 = vrot.slane %v366_v30, 4  ;;  %p876_p13 = pnand %p875_p12, %p1026_p4  ;;  %p883_p3 = por %p882_p2, %p881_p1 }
  0x23   : > { %409 = vperm.xlu1 %859, %v334_v5   ;;  %404 = vperm.xlu0 %858, %v333_v6   ;;  %v350_v41 = vadd.f32 %v349_v33, %v348_v26  ;;  %v359_v42 = vadd.f32 %v358_v34, %v357_v29  ;;  %v376_v53 = vrot.slane %v375_v43, 4  ;;  %v479_v26 = vlaneseq }
  0x24   : > { %v368_v47 = vadd.f32 %v367_v39, %v366_v30  ;;  %p877_p0 = pneg %p876_p13 }
  0x25   : > { %v351_v50 = vrot.slane %v350_v41, 2  ;;  %v360_v52 = vrot.slane %v359_v42, 2  ;;  %v377_v3 = vadd.f32 %v376_v53, %v375_v43  ;;  %v480_v36 = vshrl.u32 %v479_v26, 7  ;;  %v338_v53 = vld [vmem:[%s1092_s7 + $0x1] sm:$0x1] }
  0x26   : > { %v369_v63 = vrot.slane %v368_v47, 2  ;;  %p884_p5 = pnand %p883_p3, %p877_p0 }
  0x27   : > { %419 = vperm.xlu1 %859, %v336_v7   ;;  %414 = vperm.xlu0 %858, %v335_v8   ;;  %v352_v61 = vadd.f32 %v351_v50, %v350_v41  ;;  %v361_v1 = vadd.f32 %v360_v52, %v359_v42  ;;  %v1087_v42 = vsub.s32 0, %v480_v36 }
  0x2b   : > { %485 = vperm.xlu1 %859, %v342_v9   ;;  %476 = vperm.xlu0 %858, %v341_v10  }
  0x2f   : > { %503 = vperm.xlu1 %859, %v344_v11   ;;  %494 = vperm.xlu0 %858, %v343_v12  }
  0x33   : > { %861 = vset.pattern.permute.xlu1 %v955_v13  ;;  %860 = vset.pattern.permute.xlu0 %v955_v13 }
  0x34   : > { %523 = vperm.xlu1 %861, %v342_v9   ;;  %515 = vperm.xlu0 %860, %v341_v10  }
  0x38   : > { %531 = vperm.xlu1 %861, %v343_v12   ;;  %539 = vperm.xlu0 %860, %v344_v11  }
  0x3c   : > { %862 = vset.pattern.permute.xlu1 %v956_v14  ;;  %863 = vset.pattern.permute.xlu0 %v956_v14  ;;  %v362_v14 = vrot.slane %v361_v1, 1 }
  0x3d   : > { %551 = vperm.xlu1 %862, %v341_v10   ;;  %559 = vperm.xlu0 %863, %v342_v9  }
  0x3e   : > { %v363_v27 = vadd.f32 %v362_v14, %v361_v1 }
  0x41   : > { %567 = vperm.xlu1 %862, %v343_v12   ;;  %864 = vset.pattern.permute.xlu0 %v957_v15 }
  0x42   : > { %591 = vperm.xlu0 %864, %v341_v10   ;;  %v353_v10 = vrot.slane %v352_v61, 1 }
  0x44   : > { %v354_v24 = vadd.f32 %v353_v10, %v352_v61 }
  0x45   : > { %575 = vperm.xlu1 %862, %v344_v11  }
  0x46   : > { %615 = vperm.xlu0 %864, %v344_v11   ;;  %v370_v11 = vadd.f32 %v369_v63, %v368_v47  ;;  %866 = vrcp.f32 %v354_v24 }
  0x47   : > { %868 = vrcp.f32 %v363_v27 }
  0x48   : > { %v371_v25 = vrot.slane %v370_v11, 1 }
  0x49   : > { %865 = vset.pattern.permute.xlu1 %v957_v15 }
  0x4a   : > { %599 = vperm.xlu1 %865, %v342_v9   ;;  %v372_v35 = vadd.f32 %v371_v25, %v370_v11 }
  0x4c   : > { %870 = vrcp.f32 %v372_v35 }
  0x4e   : > { %607 = vperm.xlu1 %865, %v343_v12  }
  0x9a   : > { %v395_v37 = vpop.permute.xlu1 %394  ;;  %v385_v38 = vpop.permute.xlu0 %384 }
  0x9b   : > { %v422_v40 = vmul.f32 %v385_v38, %v321_v16  ;;  %v424_v44 = vmul.f32 %v395_v37, %v323_v18 }
  0x9d   : > { %v430_v48 = vsel %vm345_vm0, %v422_v40, 0.0  ;;  %v439_v54 = vsel %vm345_vm0, %v424_v44, 0.0 }
  0x9e   : > { %v400_v45 = vpop.permute.xlu1 %399  ;;  %v390_v46 = vpop.permute.xlu0 %389 }
  0x9f   : > { %v425_v49 = vmul.f32 %v400_v45, %v324_v19  ;;  %v423_v51 = vmul.f32 %v390_v46, %v322_v17  ;;  %v378_v17 = vrot.slane %v377_v3, 2 }
  0xa1   : > { %v440_v55 = vsel %vm345_vm0, %v425_v49, 0.0  ;;  %v431_v56 = vsel %vm345_vm0, %v423_v51, 0.0  ;;  %v379_v30 = vadd.f32 %v378_v17, %v377_v3 }
  0xa2   : > { %v441_v57 = vadd.f32 %v440_v55, %v439_v54  ;;  %v432_v58 = vadd.f32 %v431_v56, %v430_v48  ;;  %v410_v59 = vpop.permute.xlu1 %409  ;;  %v405_v60 = vpop.permute.xlu0 %404 }
  0xa3   : > { %v427_v62 = vmul.f32 %v410_v59, %v326_v22  ;;  %v426_v0 = vmul.f32 %v405_v60, %v325_v23  ;;  %v380_v39 = vrot.slane %v379_v30, 1  ;;  %v337_v59 = vld [vmem:[%s1092_s7] sm:$0x1] }
  0xa4   : > { %v433_v2 = vrot.slane %v432_v58, 4  ;;  %v442_v4 = vrot.slane %v441_v57, 4 }
  0xa5   : > { %v449_v5 = vsel %vm345_vm0, %v427_v62, 0.0  ;;  %v448_v6 = vsel %vm345_vm0, %v426_v0, 0.0  ;;  %v381_v46 = vadd.f32 %v380_v39, %v379_v30 }
  0xa6   : > { %v450_v7 = vadd.f32 %v449_v5, %v448_v6  ;;  %v420_v8 = vpop.permute.xlu1 %419  ;;  %v415_v9 = vpop.permute.xlu0 %414  ;;  %v434_v15 = vadd.f32 %v433_v2, %v432_v58  ;;  %v443_v18 = vadd.f32 %v442_v4, %v441_v57 }
  0xa7   : > { %v429_v12 = vmul.f32 %v420_v8, %v328_v31  ;;  %v428_v13 = vmul.f32 %v415_v9, %v327_v32  ;;  %872 = vrcp.f32 %v381_v46  ;;  %v867_v57 = vpop.eup %866  ;;  %v339_v8 = vld [vmem:[%s1092_s7 + $0x2] sm:$0x1] }
  0xa8   : > { %v451_v16 = vrot.slane %v450_v7, 4  ;;  %v435_v28 = vrot.slane %v434_v15, 2  ;;  %v444_v31 = vrot.slane %v443_v18, 2  ;;  %v869_v61 = vpop.eup %868 }
  0xa9   : > { %v458_v19 = vsel %vm345_vm0, %v429_v12, 0.0  ;;  %v457_v20 = vsel %vm345_vm0, %v428_v13, 0.0 }
  0xaa   : > { %v459_v21 = vadd.f32 %v458_v19, %v457_v20  ;;  %v486_v22 = vpop.permute.xlu1 %485  ;;  %v477_v23 = vpop.permute.xlu0 %476  ;;  %v452_v29 = vadd.f32 %v451_v16, %v450_v7  ;;  %v436_v37 = vadd.f32 %v435_v28, %v434_v15  ;;  %v445_v40 = vadd.f32 %v444_v31, %v443_v18  ;;  %v340_v28 = vld [vmem:[%s1092_s7 + $0x3] sm:$0x1] }
  0xab   : > { %v491_v50 = vrot.slane %v486_v22, %v1087_v42  ;;  %v482_v54 = vrot.slane %v477_v23, %v1087_v42  ;;  %v871_v7 = vpop.eup %870 }
  0xac   : > { %v460_v32 = vrot.slane %v459_v21, 4  ;;  %v453_v38 = vrot.slane %v452_v29, 2  ;;  %v437_v47 = vrot.slane %v436_v37, 1  ;;  %v446_v49 = vrot.slane %v445_v40, 1 }
  0xad   : > { %v511_v63 = vmul.f32 %v491_v50, %v338_v53  ;;  %v510_v1 = vmul.f32 %v482_v54, %v337_v59 }
  0xae   : > { %v1084_v33 = vpop.permute.xlu1 %503  ;;  %v495_v34 = vpop.permute.xlu0 %494  ;;  %v461_v41 = vadd.f32 %v460_v32, %v459_v21  ;;  %v454_v45 = vadd.f32 %v453_v38, %v452_v29  ;;  %v438_v55 = vadd.f32 %v437_v47, %v436_v37  ;;  %v447_v60 = vadd.f32 %v446_v49, %v445_v40 }
  0xaf   : > { %v500_v2 = vrot.slane %v495_v34, %v1087_v42  ;;  %v509_v18 = vrot.slane %v1084_v33, %v1087_v42 }
  0xb0   : > { %v462_v48 = vrot.slane %v461_v41, 2  ;;  %v455_v56 = vrot.slane %v454_v45, 1  ;;  %v470_v4 = vmul.f32 %v867_v57, %v438_v55  ;;  %v471_v10 = vmul.f32 %v869_v61, %v447_v60 }
  0xb1   : > { %v512_v19 = vmul.f32 %v500_v2, %v339_v8  ;;  %v873_v27 = vpop.eup %872  ;;  %v513_v35 = vmul.f32 %v509_v18, %v340_v28 }
  0xb2   : > { %v463_v58 = vadd.f32 %v462_v48, %v461_v41  ;;  %v456_v6 = vadd.f32 %v455_v56, %v454_v45 }
  0xb3   : > { %v524_v43 = vpop.permute.xlu1 %523  ;;  %v516_v44 = vpop.permute.xlu0 %515 }
  0xb4   : > { %v529_v62 = vrot.slane %v524_v43, %v1087_v42  ;;  %v521_v0 = vrot.slane %v516_v44, %v1087_v42  ;;  %v464_v12 = vrot.slane %v463_v58, 1  ;;  %v472_v21 = vmul.f32 %v871_v7, %v456_v6 }
  0xb6   : > { %v547_v13 = vadd.f32 %v529_v62, %v511_v63  ;;  %v546_v14 = vadd.f32 %v521_v0, %v510_v1  ;;  %v465_v25 = vadd.f32 %v464_v12, %v463_v58 }
  0xb7   : > { %v532_v51 = vpop.permute.xlu1 %531  ;;  %v540_v52 = vpop.permute.xlu0 %539 }
  0xb8   : > { %v537_v15 = vrot.slane %v532_v51, %v1087_v42  ;;  %v545_v31 = vrot.slane %v540_v52, %v1087_v42  ;;  %v473_v36 = vmul.f32 %v873_v27, %v465_v25 }
  0xba   : > { %v548_v30 = vadd.f32 %v537_v15, %v512_v19  ;;  %v549_v40 = vadd.f32 %v545_v31, %v513_v35 }
  0xbc   : > { %v552_v3 = vpop.permute.xlu1 %551  ;;  %v560_v5 = vpop.permute.xlu0 %559 }
  0xbd   : > { %v557_v9 = vrot.slane %v552_v3, %v1087_v42  ;;  %v565_v11 = vrot.slane %v560_v5, %v1087_v42 }
  0xbf   : > { %v582_v16 = vmul.f32 %v557_v9, %v470_v4  ;;  %v583_v17 = vmul.f32 %v565_v11, %v471_v10 }
  0xc0   : > { %v568_v20 = vpop.permute.xlu1 %567 }
  0xc1   : > { %v573_v22 = vrot.slane %v568_v20, %v1087_v42  ;;  %v586_v23 = vadd.f32 %v582_v16, %v546_v14  ;;  %v592_v24 = vpop.permute.xlu0 %591  ;;  %v587_v26 = vadd.f32 %v583_v17, %v547_v13 }
  0xc2   : > { %v597_v29 = vrot.slane %v592_v24, %v1087_v42 }
  0xc3   : > { %v584_v32 = vmul.f32 %v573_v22, %v472_v21 }
  0xc4   : > { %v622_v33 = vadd.f32 %v597_v29, %v586_v23  ;;  %v576_v34 = vpop.permute.xlu1 %575 }
  0xc5   : > { %v581_v37 = vrot.slane %v576_v34, %v1087_v42  ;;  %v616_v38 = vpop.permute.xlu0 %615  ;;  %v588_v39 = vadd.f32 %v584_v32, %v548_v30 }
  0xc6   : > { %627 = vst.msk [vmem:[%s283_s9] sm:$0x1] %vm626_vm1, %v622_v33  ;;  %v621_v43 = vrot.slane %v616_v38, %v1087_v42 }
  0xc7   : > { %v585_v41 = vmul.f32 %v581_v37, %v473_v36 }
  0xc9   : > { %v589_v44 = vadd.f32 %v585_v41, %v549_v40  ;;  %v600_v45 = vpop.permute.xlu1 %599 }
  0xca   : > { %v605_v46 = vrot.slane %v600_v45, %v1087_v42 }
  0xcb   : > { %v625_v47 = vadd.f32 %v621_v43, %v589_v44 }
  0xcc   : > { %v623_v48 = vadd.f32 %v605_v46, %v587_v26 }
  0xcd   : > { %630 = vst.msk [vmem:[%s283_s9 + $0x3] sm:$0x1] %vm626_vm1, %v625_v47  ;;  %v608_v49 = vpop.permute.xlu1 %607 }
  0xce   : > { %628 = vst.msk [vmem:[%s283_s9 + $0x1] sm:$0x1] %vm626_vm1, %v623_v48  ;;  %v613_v50 = vrot.slane %v608_v49, %v1087_v42 }
  0xd0   : > { %v624_v51 = vadd.f32 %v613_v50, %v588_v39 }
  0xd2   : > { %629 = vst.msk [vmem:[%s283_s9 + $0x2] sm:$0x1] %vm626_vm1, %v624_v51 }
  0xd3   : > { %887 = shalt.err (!%p884_p5)
}
  0xd4   : > { %s888_s30 = scalar_lea.hbm %s1125_s14, 64  ;;  %s892_s7 = scalar_lea.hbm %s1182_s4, 128 }
  0xd5   : > { %p889_p6 = scmp.ne.s32.totalorder %s1125_s14, %s888_s30  ;;  %p893_p10 = scmp.lt.u32.totalorder %s1125_s14, %s1182_s4 }
  0xd6   : > { %p894_p11 = scmp.lt.u32.totalorder %s892_s7, %s888_s30  ;;  %p896_p13 = scmp.lt.u32.totalorder %s888_s30, %s1125_s14 }
  0xd7   : > { %p890_p7 = pnand %p889_p6, %p1026_p4 }
  0xd8   : > { %p895_p12 = por %p894_p11, %p893_p10 }
  0xd9   : > { %p891_p9 = pneg %p890_p7 }
  0xda   : > { %p897_p0 = por %p896_p13, %p895_p12 }
  0xdc   : > { %p898_p1 = pnand %p897_p0, %p891_p9 }
  0xde   : > { %901 = shalt.err (!%p898_p1)
}
  0xdf   : > { %s959_s9 = smov 16   ;;  %s960_s11 = smov 1  }
  0xe0   : > { %797 = dma.vmem_to_hbm [thread:$0]  (%p1026_p4), %s1127_s10, 64, %s1125_s14, %s1132_s18, %s959_s9, %s959_s9, %s960_s11  }
  0xe1 PF: > { %p803_p2 = scmp.ge.s32.totalorder %s952_s20, 2  ;;  %s662_s12 = sand.u32 1, %s932_s15  }
  0xe2   : > { %s663_s13 = scalar_lea.sflag [#allocation3], %s662_s12 }
  0xe3   : > { %p800_p3 = pnand %p803_p2, %p1033_p8 }
  0xe5   : > { %927 = dma.done.wait (!%p800_p3), %s663_s13, 64  }
  0xe6   : > { %929 = vsyncadd (!%p800_p3), %s663_s13, 4294967232  ;;  %s17_s20 = sadd.s32 1, %s952_s20   ;;  %s1185_s15 = smov %s936_s16 }
  0xe7   : > { %p14_p5 = scmp.ge.s32.totalorder %s17_s20, 4   ;;  %s1186_s16 = smov %s940_s17 }
  0xe8   : > { %s1187_s17 = smov %s1039_s28  ;;  %s1188_s18 = smov %s948_s19 }
  0xe9   : > { %s1189_s19 = smov %s1191_s23  ;;  %16 = sbr.rel (!%p14_p5) target bundleno = 4 (0x4), region = 80 }
  0xf0   :  { %668 = vsyncpa [#allocation3], 1 }
  0xf1   :  { %670 = vsyncpa [#allocation3 + $0x1], 1 }

</bundles_post_ra>
